<compile_context>
chip_gen: v7x
topology: tpu7x:2x2x1
jax: 0.10.0
libtpu: 0.0.40
codegen_flags: <defaults>
</compile_context>

<pallas_src>
import jax
import jax.numpy as jnp
from jax.experimental import pallas as pl
from jax.experimental.pallas import tpu as pltpu


def _encoder_kernel(xblk_ref, wih_ref, bih_ref, whh_ref, bhhn_ref,
                    wtf_ref, wtb_ref, bt_ref, out_ref, hid_ref):
    L, B2, D2 = xblk_ref.shape          # B2 = 2B (fwd rows 0:B, bwd rows B:2B), D2 = 2D
    B = B2 // 2
    H = bhhn_ref.shape[1]
    H2, H3 = 2 * H, 3 * H
    D = wtf_ref.shape[1]

    # ---- whole-sequence input projection for BOTH directions, ONE MXU matmul ----
    xp = jnp.dot(xblk_ref[...].reshape(L * B2, D2), wih_ref[...],
                 preferred_element_type=jnp.float32)                  # [L*2B, 3H]
    # Per-step gate slabs, already stacked on the sublane axis and time-aligned:
    # rows 0:B = fwd gates at time t, rows B:2B = bwd gates at time L-1-t.
    # r/z hidden biases were folded into bih on the host, so this is the full gx term.
    gx_all = xp.reshape(L, B2, H3) + bih_ref[...]                     # [L, 2B, 3H]

    # ---- loop invariants hoisted (no per-step broadcasts) ----
    whhT = whh_ref[...]                                               # [2H, 3H] (fwd|bwd stacked rows)
    bhh_n = bhhn_ref[...]                                             # [2B, H] n-gate hidden bias
    rows = jax.lax.broadcasted_iota(jnp.int32, (B2, H), 0)
    sel_f = (rows < B).astype(jnp.float32)                            # rows 0:B -> left block
    sel_b = 1.0 - sel_f                                               # rows B:2B -> right block

    # ---- fused, statically unrolled bidirectional recurrence (state in vregs) ----
    h = jnp.zeros((B2, H), jnp.float32)                               # [h_f ; h_b]
    hf_out = [None] * L
    hb_out = [None] * L
    for t in range(L):                                                # static unroll (L small)
        gx = gx_all[t]                                                # [2B, 3H]
        # block-diagonal placement -> single recurrent MXU matmul for both directions
        h_blk = jnp.concatenate([h * sel_f, h * sel_b], axis=1)       # [2B, 2H]
        gh = jnp.dot(h_blk, whhT, preferred_element_type=jnp.float32) # [2B, 3H]
        rz = jax.nn.sigmoid(gx[:, :H2] + gh[:, :H2])                  # one sigmoid for r and z
        r = rz[:, :H]
        z = rz[:, H:]
        n = jnp.tanh(gx[:, H2:] + r * (gh[:, H2:] + bhh_n))           # bhh_n stays inside r*(...)
        h = n + z * (h - n)                                           # == (1-z)*n + z*h
        hf_out[t] = h[:B]
        hb_out[L - 1 - t] = h[B:]

    # PyTorch GRU hidden layout for one bidirectional layer: [2, B, H] (fwd, bwd).
    hid_ref[0] = h[:B]
    hid_ref[1] = h[B:]

    # ---- transform: Linear(2H -> D), split per direction (no lane-axis concat) ----
    hf_all = jnp.concatenate(hf_out, axis=0)                          # [L*B, H] time order
    hb_all = jnp.concatenate(hb_out, axis=0)                          # [L*B, H] time order
    y = (jnp.dot(hf_all, wtf_ref[...], preferred_element_type=jnp.float32)
         + jnp.dot(hb_all, wtb_ref[...], preferred_element_type=jnp.float32)
         + bt_ref[...])                                               # [L*B, D]
    out_ref[...] = y.reshape(L, B, D)


def encoder_forward(x, params):
    """x: [L, B, D] float32. Returns (outputs [L, B, D], hidden [2, B, H])."""
    L, B, D = x.shape
    H = params["whh_f"].shape[1]
    H2, H3 = 2 * H, 3 * H
    f32 = jnp.float32

    # ---- host-side (wrapper/XLA) layout prep, done once per call ----
    # Block-diagonal, time-aligned input: rows 0:B -> [x_t, 0], rows B:2B -> [0, x_{L-1-t}].
    # This makes the in-kernel input projection a single matmul and removes any in-kernel
    # time reversal / per-step gate-slab extraction.
    zx = jnp.zeros_like(x)
    x_blk = jnp.concatenate(
        [jnp.concatenate([x, zx], axis=-1),
         jnp.concatenate([zx, x[::-1]], axis=-1)], axis=1)            # [L, 2B, 2D]

    wih_blk = jnp.concatenate([params["wih_f"].T, params["wih_b"].T], axis=0)  # [2D, 3H]

    def fold_rz(bih, bhh):  # fold r/z hidden biases into the input bias (n slot stays 0)
        return bih + jnp.concatenate([bhh[:H2], jnp.zeros((H,), f32)])

    bih_stacked = jnp.concatenate(
        [jnp.broadcast_to(fold_rz(params["bih_f"], params["bhh_f"]), (B, H3)),
         jnp.broadcast_to(fold_rz(params["bih_b"], params["bhh_b"]), (B, H3))],
        axis=0)                                                       # [2B, 3H]

    whhT_all = jnp.concatenate([params["whh_f"].T, params["whh_b"].T], axis=0)  # [2H, 3H]

    bhhn_stacked = jnp.concatenate(
        [jnp.broadcast_to(params["bhh_f"][H2:], (B, H)),
         jnp.broadcast_to(params["bhh_b"][H2:], (B, H))], axis=0)     # [2B, H]

    wtT = params["wt"].T                                              # [2H, D]
    wtT_f, wtT_b = wtT[:H], wtT[H:]                                   # [H, D] each
    bt = params["bt"].reshape(1, D)

    args = (x_blk, wih_blk, bih_stacked, whhT_all, bhhn_stacked, wtT_f, wtT_b, bt)
    vmem = lambda: pl.BlockSpec(memory_space=pltpu.MemorySpace.VMEM)

    out, hid = pl.pallas_call(
        _encoder_kernel,
        out_shape=(jax.ShapeDtypeStruct((L, B, D), f32),
                   jax.ShapeDtypeStruct((2, B, H), f32)),
        in_specs=[vmem() for _ in args],
        out_specs=(vmem(), vmem()),
    )(*args)
    return out, hid


def _ref_forward(x, p):
    """Pure-JAX reference mirroring PyTorch bi-GRU (eval) + Linear."""
    L, B, D = x.shape
    H = p["whh_f"].shape[1]

    def gru_dir(wih, whh, bih, bhh, reverse):
        h = jnp.zeros((B, H), jnp.float32)
        out = [None] * L
        ts = range(L - 1, -1, -1) if reverse else range(L)
        for t in ts:
            gx = x[t] @ wih.T + bih
            gh = h @ whh.T + bhh
            r = jax.nn.sigmoid(gx[:, :H] + gh[:, :H])
            z = jax.nn.sigmoid(gx[:, H:2 * H] + gh[:, H:2 * H])
            n = jnp.tanh(gx[:, 2 * H:] + r * gh[:, 2 * H:])
            h = (1.0 - z) * n + z * h
            out[t] = h
        return jnp.stack(out, axis=0), h

    of, hf = gru_dir(p["wih_f"], p["whh_f"], p["bih_f"], p["bhh_f"], False)
    ob, hb = gru_dir(p["wih_b"], p["whh_b"], p["bih_b"], p["bhh_b"], True)
    g = jnp.concatenate([of, ob], axis=-1)
    y = g @ p["wt"].T + p["bt"]
    return y, jnp.stack([hf, hb], axis=0)


if __name__ == "__main__":
    # Small shapes implied by the module: seq=8 (incl. ROOT), batch=2,
    # input_size=16, hidden_size=32, num_layers=1, bidirectional.
    L, B, D, H = 8, 2, 16, 32
    key = jax.random.PRNGKey(0)
    keys = jax.random.split(key, 11)
    s = 1.0 / jnp.sqrt(jnp.float32(H))

    def u(k, shape):
        return jax.random.uniform(k, shape, jnp.float32, -s, s)

    params = {
        "wih_f": u(keys[0], (3 * H, D)), "whh_f": u(keys[1], (3 * H, H)),
        "bih_f": u(keys[2], (3 * H,)),   "bhh_f": u(keys[3], (3 * H,)),
        "wih_b": u(keys[4], (3 * H, D)), "whh_b": u(keys[5], (3 * H, H)),
        "bih_b": u(keys[6], (3 * H,)),   "bhh_b": u(keys[7], (3 * H,)),
        "wt":    u(keys[8], (D, 2 * H)), "bt":    u(keys[9], (D,)),
    }
    x = jax.random.normal(keys[10], (L, B, D), jnp.float32)

    out, hid = encoder_forward(x, params)
    jax.block_until_ready((out, hid))

    ref_out, ref_hid = _ref_forward(x, params)
    assert out.shape == (L, B, D) and hid.shape == (2, B, H)
    assert jnp.allclose(out, ref_out, atol=1e-4, rtol=1e-4)
    assert jnp.allclose(hid, ref_hid, atol=1e-4, rtol=1e-4)
    print("KERNEL_OK")
</pallas_src>

<mosaic_0001>
module attributes {stable_mosaic.version = 11 : i64} {
  func.func @_encoder_kernel(%arg0: memref<8x4x32xf32, #tpu.memory_space<vmem>>, %arg1: memref<32x96xf32, #tpu.memory_space<vmem>>, %arg2: memref<4x96xf32, #tpu.memory_space<vmem>>, %arg3: memref<64x96xf32, #tpu.memory_space<vmem>>, %arg4: memref<4x32xf32, #tpu.memory_space<vmem>>, %arg5: memref<32x16xf32, #tpu.memory_space<vmem>>, %arg6: memref<32x16xf32, #tpu.memory_space<vmem>>, %arg7: memref<1x16xf32, #tpu.memory_space<vmem>>, %arg8: memref<8x2x16xf32, #tpu.memory_space<vmem>>, %arg9: memref<2x2x32xf32, #tpu.memory_space<vmem>>) attributes {dimension_semantics = [], scalar_prefetch = 0 : i64, scratch_operands = 0 : i64, tpu.core_type = #tpu.core_type<tc>} {
    %c0 = arith.constant 0 : index
    %c0_0 = arith.constant 0 : index
    %c0_1 = arith.constant 0 : index
    %0 = vector.load %arg0[%c0, %c0_0, %c0_1] : memref<8x4x32xf32, #tpu.memory_space<vmem>>, vector<8x4x32xf32>
    %1 = vector.shape_cast %0 : vector<8x4x32xf32> to vector<32x32xf32>
    %c0_2 = arith.constant 0 : index
    %c0_3 = arith.constant 0 : index
    %2 = vector.load %arg1[%c0_2, %c0_3] : memref<32x96xf32, #tpu.memory_space<vmem>>, vector<32x96xf32>
    %cst = arith.constant dense<0.000000e+00> : vector<32x96xf32>
    %3 = tpu.matmul %1, %2, %cst {dimension_numbers = #tpu.dot_dimension_numbers<[1], [0], [0], [1], [0, 0, 1, 1], [], []>} : vector<32x32xf32>, vector<32x96xf32>, vector<32x96xf32> -> vector<32x96xf32>
    %4 = vector.shape_cast %3 : vector<32x96xf32> to vector<8x4x96xf32>
    %c0_4 = arith.constant 0 : index
    %c0_5 = arith.constant 0 : index
    %5 = vector.load %arg2[%c0_4, %c0_5] : memref<4x96xf32, #tpu.memory_space<vmem>>, vector<4x96xf32>
    %6 = vector.shape_cast %5 : vector<4x96xf32> to vector<1x4x96xf32>
    %7 = vector.broadcast %6 : vector<1x4x96xf32> to vector<8x4x96xf32>
    %8 = arith.addf %4, %7 : vector<8x4x96xf32>
    %c0_6 = arith.constant 0 : index
    %c0_7 = arith.constant 0 : index
    %9 = vector.load %arg3[%c0_6, %c0_7] : memref<64x96xf32, #tpu.memory_space<vmem>>, vector<64x96xf32>
    %c0_8 = arith.constant 0 : index
    %c0_9 = arith.constant 0 : index
    %10 = vector.load %arg4[%c0_8, %c0_9] : memref<4x32xf32, #tpu.memory_space<vmem>>, vector<4x32xf32>
    %11 = tpu.iota {dimensions = array<i32: 0>} : vector<4x32xi32>
    %c2_i32 = arith.constant 2 : i32
    %12 = vector.broadcast %c2_i32 : i32 to vector<4x32xi32>
    %13 = arith.cmpi slt, %11, %12 : vector<4x32xi32>
    %14 = arith.extui %13 : vector<4x32xi1> to vector<4x32xi32>
    %15 = arith.sitofp %14 : vector<4x32xi32> to vector<4x32xf32>
    %cst_10 = arith.constant 1.000000e+00 : f32
    %16 = vector.broadcast %cst_10 : f32 to vector<4x32xf32>
    %17 = arith.subf %16, %15 : vector<4x32xf32>
    %cst_11 = arith.constant 0.000000e+00 : f32
    %18 = vector.broadcast %cst_11 : f32 to vector<4x32xf32>
    %19 = vector.extract_strided_slice %8 {offsets = [0, 0, 0], sizes = [1, 4, 96], strides = [1, 1, 1]} : vector<8x4x96xf32> to vector<1x4x96xf32>
    %20 = vector.shape_cast %19 : vector<1x4x96xf32> to vector<4x96xf32>
    %21 = arith.mulf %18, %15 : vector<4x32xf32>
    %22 = arith.mulf %18, %17 : vector<4x32xf32>
    %23 = tpu.concatenate %21, %22 in 1 : vector<4x32xf32>, vector<4x32xf32> -> vector<4x64xf32>
    %cst_12 = arith.constant dense<0.000000e+00> : vector<4x96xf32>
    %24 = tpu.matmul %23, %9, %cst_12 {dimension_numbers = #tpu.dot_dimension_numbers<[1], [0], [0], [1], [0, 0, 1, 1], [], []>} : vector<4x64xf32>, vector<64x96xf32>, vector<4x96xf32> -> vector<4x96xf32>
    %25 = vector.extract_strided_slice %20 {offsets = [0, 0], sizes = [4, 64], strides = [1, 1]} : vector<4x96xf32> to vector<4x64xf32>
    %26 = vector.extract_strided_slice %24 {offsets = [0, 0], sizes = [4, 64], strides = [1, 1]} : vector<4x96xf32> to vector<4x64xf32>
    %27 = arith.addf %25, %26 : vector<4x64xf32>
    %28 = arith.negf %27 : vector<4x64xf32>
    %29 = math.exp %28 : vector<4x64xf32>
    %cst_13 = arith.constant 1.000000e+00 : f32
    %30 = vector.broadcast %cst_13 : f32 to vector<4x64xf32>
    %31 = arith.addf %30, %29 : vector<4x64xf32>
    %32 = arith.divf %30, %31 : vector<4x64xf32>
    %33 = vector.extract_strided_slice %32 {offsets = [0, 0], sizes = [4, 32], strides = [1, 1]} : vector<4x64xf32> to vector<4x32xf32>
    %34 = vector.extract_strided_slice %32 {offsets = [0, 32], sizes = [4, 32], strides = [1, 1]} : vector<4x64xf32> to vector<4x32xf32>
    %35 = vector.extract_strided_slice %20 {offsets = [0, 64], sizes = [4, 32], strides = [1, 1]} : vector<4x96xf32> to vector<4x32xf32>
    %36 = vector.extract_strided_slice %24 {offsets = [0, 64], sizes = [4, 32], strides = [1, 1]} : vector<4x96xf32> to vector<4x32xf32>
    %37 = arith.addf %36, %10 : vector<4x32xf32>
    %38 = arith.mulf %33, %37 : vector<4x32xf32>
    %39 = arith.addf %35, %38 : vector<4x32xf32>
    %40 = math.tanh %39 : vector<4x32xf32>
    %41 = arith.subf %18, %40 : vector<4x32xf32>
    %42 = arith.mulf %34, %41 : vector<4x32xf32>
    %43 = arith.addf %40, %42 : vector<4x32xf32>
    %44 = vector.extract_strided_slice %43 {offsets = [0, 0], sizes = [2, 32], strides = [1, 1]} : vector<4x32xf32> to vector<2x32xf32>
    %45 = vector.extract_strided_slice %43 {offsets = [2, 0], sizes = [2, 32], strides = [1, 1]} : vector<4x32xf32> to vector<2x32xf32>
    %46 = vector.extract_strided_slice %8 {offsets = [1, 0, 0], sizes = [1, 4, 96], strides = [1, 1, 1]} : vector<8x4x96xf32> to vector<1x4x96xf32>
    %47 = vector.shape_cast %46 : vector<1x4x96xf32> to vector<4x96xf32>
    %48 = arith.mulf %43, %15 : vector<4x32xf32>
    %49 = arith.mulf %43, %17 : vector<4x32xf32>
    %50 = tpu.concatenate %48, %49 in 1 : vector<4x32xf32>, vector<4x32xf32> -> vector<4x64xf32>
    %cst_14 = arith.constant dense<0.000000e+00> : vector<4x96xf32>
    %51 = tpu.matmul %50, %9, %cst_14 {dimension_numbers = #tpu.dot_dimension_numbers<[1], [0], [0], [1], [0, 0, 1, 1], [], []>} : vector<4x64xf32>, vector<64x96xf32>, vector<4x96xf32> -> vector<4x96xf32>
    %52 = vector.extract_strided_slice %47 {offsets = [0, 0], sizes = [4, 64], strides = [1, 1]} : vector<4x96xf32> to vector<4x64xf32>
    %53 = vector.extract_strided_slice %51 {offsets = [0, 0], sizes = [4, 64], strides = [1, 1]} : vector<4x96xf32> to vector<4x64xf32>
    %54 = arith.addf %52, %53 : vector<4x64xf32>
    %55 = arith.negf %54 : vector<4x64xf32>
    %56 = math.exp %55 : vector<4x64xf32>
    %cst_15 = arith.constant 1.000000e+00 : f32
    %57 = vector.broadcast %cst_15 : f32 to vector<4x64xf32>
    %58 = arith.addf %57, %56 : vector<4x64xf32>
    %59 = arith.divf %57, %58 : vector<4x64xf32>
    %60 = vector.extract_strided_slice %59 {offsets = [0, 0], sizes = [4, 32], strides = [1, 1]} : vector<4x64xf32> to vector<4x32xf32>
    %61 = vector.extract_strided_slice %59 {offsets = [0, 32], sizes = [4, 32], strides = [1, 1]} : vector<4x64xf32> to vector<4x32xf32>
    %62 = vector.extract_strided_slice %47 {offsets = [0, 64], sizes = [4, 32], strides = [1, 1]} : vector<4x96xf32> to vector<4x32xf32>
    %63 = vector.extract_strided_slice %51 {offsets = [0, 64], sizes = [4, 32], strides = [1, 1]} : vector<4x96xf32> to vector<4x32xf32>
    %64 = arith.addf %63, %10 : vector<4x32xf32>
    %65 = arith.mulf %60, %64 : vector<4x32xf32>
    %66 = arith.addf %62, %65 : vector<4x32xf32>
    %67 = math.tanh %66 : vector<4x32xf32>
    %68 = arith.subf %43, %67 : vector<4x32xf32>
    %69 = arith.mulf %61, %68 : vector<4x32xf32>
    %70 = arith.addf %67, %69 : vector<4x32xf32>
    %71 = vector.extract_strided_slice %70 {offsets = [0, 0], sizes = [2, 32], strides = [1, 1]} : vector<4x32xf32> to vector<2x32xf32>
    %72 = vector.extract_strided_slice %70 {offsets = [2, 0], sizes = [2, 32], strides = [1, 1]} : vector<4x32xf32> to vector<2x32xf32>
    %73 = vector.extract_strided_slice %8 {offsets = [2, 0, 0], sizes = [1, 4, 96], strides = [1, 1, 1]} : vector<8x4x96xf32> to vector<1x4x96xf32>
    %74 = vector.shape_cast %73 : vector<1x4x96xf32> to vector<4x96xf32>
    %75 = arith.mulf %70, %15 : vector<4x32xf32>
    %76 = arith.mulf %70, %17 : vector<4x32xf32>
    %77 = tpu.concatenate %75, %76 in 1 : vector<4x32xf32>, vector<4x32xf32> -> vector<4x64xf32>
    %cst_16 = arith.constant dense<0.000000e+00> : vector<4x96xf32>
    %78 = tpu.matmul %77, %9, %cst_16 {dimension_numbers = #tpu.dot_dimension_numbers<[1], [0], [0], [1], [0, 0, 1, 1], [], []>} : vector<4x64xf32>, vector<64x96xf32>, vector<4x96xf32> -> vector<4x96xf32>
    %79 = vector.extract_strided_slice %74 {offsets = [0, 0], sizes = [4, 64], strides = [1, 1]} : vector<4x96xf32> to vector<4x64xf32>
    %80 = vector.extract_strided_slice %78 {offsets = [0, 0], sizes = [4, 64], strides = [1, 1]} : vector<4x96xf32> to vector<4x64xf32>
    %81 = arith.addf %79, %80 : vector<4x64xf32>
    %82 = arith.negf %81 : vector<4x64xf32>
    %83 = math.exp %82 : vector<4x64xf32>
    %cst_17 = arith.constant 1.000000e+00 : f32
    %84 = vector.broadcast %cst_17 : f32 to vector<4x64xf32>
    %85 = arith.addf %84, %83 : vector<4x64xf32>
    %86 = arith.divf %84, %85 : vector<4x64xf32>
    %87 = vector.extract_strided_slice %86 {offsets = [0, 0], sizes = [4, 32], strides = [1, 1]} : vector<4x64xf32> to vector<4x32xf32>
    %88 = vector.extract_strided_slice %86 {offsets = [0, 32], sizes = [4, 32], strides = [1, 1]} : vector<4x64xf32> to vector<4x32xf32>
    %89 = vector.extract_strided_slice %74 {offsets = [0, 64], sizes = [4, 32], strides = [1, 1]} : vector<4x96xf32> to vector<4x32xf32>
    %90 = vector.extract_strided_slice %78 {offsets = [0, 64], sizes = [4, 32], strides = [1, 1]} : vector<4x96xf32> to vector<4x32xf32>
    %91 = arith.addf %90, %10 : vector<4x32xf32>
    %92 = arith.mulf %87, %91 : vector<4x32xf32>
    %93 = arith.addf %89, %92 : vector<4x32xf32>
    %94 = math.tanh %93 : vector<4x32xf32>
    %95 = arith.subf %70, %94 : vector<4x32xf32>
    %96 = arith.mulf %88, %95 : vector<4x32xf32>
    %97 = arith.addf %94, %96 : vector<4x32xf32>
    %98 = vector.extract_strided_slice %97 {offsets = [0, 0], sizes = [2, 32], strides = [1, 1]} : vector<4x32xf32> to vector<2x32xf32>
    %99 = vector.extract_strided_slice %97 {offsets = [2, 0], sizes = [2, 32], strides = [1, 1]} : vector<4x32xf32> to vector<2x32xf32>
    %100 = vector.extract_strided_slice %8 {offsets = [3, 0, 0], sizes = [1, 4, 96], strides = [1, 1, 1]} : vector<8x4x96xf32> to vector<1x4x96xf32>
    %101 = vector.shape_cast %100 : vector<1x4x96xf32> to vector<4x96xf32>
    %102 = arith.mulf %97, %15 : vector<4x32xf32>
    %103 = arith.mulf %97, %17 : vector<4x32xf32>
    %104 = tpu.concatenate %102, %103 in 1 : vector<4x32xf32>, vector<4x32xf32> -> vector<4x64xf32>
    %cst_18 = arith.constant dense<0.000000e+00> : vector<4x96xf32>
    %105 = tpu.matmul %104, %9, %cst_18 {dimension_numbers = #tpu.dot_dimension_numbers<[1], [0], [0], [1], [0, 0, 1, 1], [], []>} : vector<4x64xf32>, vector<64x96xf32>, vector<4x96xf32> -> vector<4x96xf32>
    %106 = vector.extract_strided_slice %101 {offsets = [0, 0], sizes = [4, 64], strides = [1, 1]} : vector<4x96xf32> to vector<4x64xf32>
    %107 = vector.extract_strided_slice %105 {offsets = [0, 0], sizes = [4, 64], strides = [1, 1]} : vector<4x96xf32> to vector<4x64xf32>
    %108 = arith.addf %106, %107 : vector<4x64xf32>
    %109 = arith.negf %108 : vector<4x64xf32>
    %110 = math.exp %109 : vector<4x64xf32>
    %cst_19 = arith.constant 1.000000e+00 : f32
    %111 = vector.broadcast %cst_19 : f32 to vector<4x64xf32>
    %112 = arith.addf %111, %110 : vector<4x64xf32>
    %113 = arith.divf %111, %112 : vector<4x64xf32>
    %114 = vector.extract_strided_slice %113 {offsets = [0, 0], sizes = [4, 32], strides = [1, 1]} : vector<4x64xf32> to vector<4x32xf32>
    %115 = vector.extract_strided_slice %113 {offsets = [0, 32], sizes = [4, 32], strides = [1, 1]} : vector<4x64xf32> to vector<4x32xf32>
    %116 = vector.extract_strided_slice %101 {offsets = [0, 64], sizes = [4, 32], strides = [1, 1]} : vector<4x96xf32> to vector<4x32xf32>
    %117 = vector.extract_strided_slice %105 {offsets = [0, 64], sizes = [4, 32], strides = [1, 1]} : vector<4x96xf32> to vector<4x32xf32>
    %118 = arith.addf %117, %10 : vector<4x32xf32>
    %119 = arith.mulf %114, %118 : vector<4x32xf32>
    %120 = arith.addf %116, %119 : vector<4x32xf32>
    %121 = math.tanh %120 : vector<4x32xf32>
    %122 = arith.subf %97, %121 : vector<4x32xf32>
    %123 = arith.mulf %115, %122 : vector<4x32xf32>
    %124 = arith.addf %121, %123 : vector<4x32xf32>
    %125 = vector.extract_strided_slice %124 {offsets = [0, 0], sizes = [2, 32], strides = [1, 1]} : vector<4x32xf32> to vector<2x32xf32>
    %126 = vector.extract_strided_slice %124 {offsets = [2, 0], sizes = [2, 32], strides = [1, 1]} : vector<4x32xf32> to vector<2x32xf32>
    %127 = vector.extract_strided_slice %8 {offsets = [4, 0, 0], sizes = [1, 4, 96], strides = [1, 1, 1]} : vector<8x4x96xf32> to vector<1x4x96xf32>
    %128 = vector.shape_cast %127 : vector<1x4x96xf32> to vector<4x96xf32>
    %129 = arith.mulf %124, %15 : vector<4x32xf32>
    %130 = arith.mulf %124, %17 : vector<4x32xf32>
    %131 = tpu.concatenate %129, %130 in 1 : vector<4x32xf32>, vector<4x32xf32> -> vector<4x64xf32>
    %cst_20 = arith.constant dense<0.000000e+00> : vector<4x96xf32>
    %132 = tpu.matmul %131, %9, %cst_20 {dimension_numbers = #tpu.dot_dimension_numbers<[1], [0], [0], [1], [0, 0, 1, 1], [], []>} : vector<4x64xf32>, vector<64x96xf32>, vector<4x96xf32> -> vector<4x96xf32>
    %133 = vector.extract_strided_slice %128 {offsets = [0, 0], sizes = [4, 64], strides = [1, 1]} : vector<4x96xf32> to vector<4x64xf32>
    %134 = vector.extract_strided_slice %132 {offsets = [0, 0], sizes = [4, 64], strides = [1, 1]} : vector<4x96xf32> to vector<4x64xf32>
    %135 = arith.addf %133, %134 : vector<4x64xf32>
    %136 = arith.negf %135 : vector<4x64xf32>
    %137 = math.exp %136 : vector<4x64xf32>
    %cst_21 = arith.constant 1.000000e+00 : f32
    %138 = vector.broadcast %cst_21 : f32 to vector<4x64xf32>
    %139 = arith.addf %138, %137 : vector<4x64xf32>
    %140 = arith.divf %138, %139 : vector<4x64xf32>
    %141 = vector.extract_strided_slice %140 {offsets = [0, 0], sizes = [4, 32], strides = [1, 1]} : vector<4x64xf32> to vector<4x32xf32>
    %142 = vector.extract_strided_slice %140 {offsets = [0, 32], sizes = [4, 32], strides = [1, 1]} : vector<4x64xf32> to vector<4x32xf32>
    %143 = vector.extract_strided_slice %128 {offsets = [0, 64], sizes = [4, 32], strides = [1, 1]} : vector<4x96xf32> to vector<4x32xf32>
    %144 = vector.extract_strided_slice %132 {offsets = [0, 64], sizes = [4, 32], strides = [1, 1]} : vector<4x96xf32> to vector<4x32xf32>
    %145 = arith.addf %144, %10 : vector<4x32xf32>
    %146 = arith.mulf %141, %145 : vector<4x32xf32>
    %147 = arith.addf %143, %146 : vector<4x32xf32>
    %148 = math.tanh %147 : vector<4x32xf32>
    %149 = arith.subf %124, %148 : vector<4x32xf32>
    %150 = arith.mulf %142, %149 : vector<4x32xf32>
    %151 = arith.addf %148, %150 : vector<4x32xf32>
    %152 = vector.extract_strided_slice %151 {offsets = [0, 0], sizes = [2, 32], strides = [1, 1]} : vector<4x32xf32> to vector<2x32xf32>
    %153 = vector.extract_strided_slice %151 {offsets = [2, 0], sizes = [2, 32], strides = [1, 1]} : vector<4x32xf32> to vector<2x32xf32>
    %154 = vector.extract_strided_slice %8 {offsets = [5, 0, 0], sizes = [1, 4, 96], strides = [1, 1, 1]} : vector<8x4x96xf32> to vector<1x4x96xf32>
    %155 = vector.shape_cast %154 : vector<1x4x96xf32> to vector<4x96xf32>
    %156 = arith.mulf %151, %15 : vector<4x32xf32>
    %157 = arith.mulf %151, %17 : vector<4x32xf32>
    %158 = tpu.concatenate %156, %157 in 1 : vector<4x32xf32>, vector<4x32xf32> -> vector<4x64xf32>
    %cst_22 = arith.constant dense<0.000000e+00> : vector<4x96xf32>
    %159 = tpu.matmul %158, %9, %cst_22 {dimension_numbers = #tpu.dot_dimension_numbers<[1], [0], [0], [1], [0, 0, 1, 1], [], []>} : vector<4x64xf32>, vector<64x96xf32>, vector<4x96xf32> -> vector<4x96xf32>
    %160 = vector.extract_strided_slice %155 {offsets = [0, 0], sizes = [4, 64], strides = [1, 1]} : vector<4x96xf32> to vector<4x64xf32>
    %161 = vector.extract_strided_slice %159 {offsets = [0, 0], sizes = [4, 64], strides = [1, 1]} : vector<4x96xf32> to vector<4x64xf32>
    %162 = arith.addf %160, %161 : vector<4x64xf32>
    %163 = arith.negf %162 : vector<4x64xf32>
    %164 = math.exp %163 : vector<4x64xf32>
    %cst_23 = arith.constant 1.000000e+00 : f32
    %165 = vector.broadcast %cst_23 : f32 to vector<4x64xf32>
    %166 = arith.addf %165, %164 : vector<4x64xf32>
    %167 = arith.divf %165, %166 : vector<4x64xf32>
    %168 = vector.extract_strided_slice %167 {offsets = [0, 0], sizes = [4, 32], strides = [1, 1]} : vector<4x64xf32> to vector<4x32xf32>
    %169 = vector.extract_strided_slice %167 {offsets = [0, 32], sizes = [4, 32], strides = [1, 1]} : vector<4x64xf32> to vector<4x32xf32>
    %170 = vector.extract_strided_slice %155 {offsets = [0, 64], sizes = [4, 32], strides = [1, 1]} : vector<4x96xf32> to vector<4x32xf32>
    %171 = vector.extract_strided_slice %159 {offsets = [0, 64], sizes = [4, 32], strides = [1, 1]} : vector<4x96xf32> to vector<4x32xf32>
    %172 = arith.addf %171, %10 : vector<4x32xf32>
    %173 = arith.mulf %168, %172 : vector<4x32xf32>
    %174 = arith.addf %170, %173 : vector<4x32xf32>
    %175 = math.tanh %174 : vector<4x32xf32>
    %176 = arith.subf %151, %175 : vector<4x32xf32>
    %177 = arith.mulf %169, %176 : vector<4x32xf32>
    %178 = arith.addf %175, %177 : vector<4x32xf32>
    %179 = vector.extract_strided_slice %178 {offsets = [0, 0], sizes = [2, 32], strides = [1, 1]} : vector<4x32xf32> to vector<2x32xf32>
    %180 = vector.extract_strided_slice %178 {offsets = [2, 0], sizes = [2, 32], strides = [1, 1]} : vector<4x32xf32> to vector<2x32xf32>
    %181 = vector.extract_strided_slice %8 {offsets = [6, 0, 0], sizes = [1, 4, 96], strides = [1, 1, 1]} : vector<8x4x96xf32> to vector<1x4x96xf32>
    %182 = vector.shape_cast %181 : vector<1x4x96xf32> to vector<4x96xf32>
    %183 = arith.mulf %178, %15 : vector<4x32xf32>
    %184 = arith.mulf %178, %17 : vector<4x32xf32>
    %185 = tpu.concatenate %183, %184 in 1 : vector<4x32xf32>, vector<4x32xf32> -> vector<4x64xf32>
    %cst_24 = arith.constant dense<0.000000e+00> : vector<4x96xf32>
    %186 = tpu.matmul %185, %9, %cst_24 {dimension_numbers = #tpu.dot_dimension_numbers<[1], [0], [0], [1], [0, 0, 1, 1], [], []>} : vector<4x64xf32>, vector<64x96xf32>, vector<4x96xf32> -> vector<4x96xf32>
    %187 = vector.extract_strided_slice %182 {offsets = [0, 0], sizes = [4, 64], strides = [1, 1]} : vector<4x96xf32> to vector<4x64xf32>
    %188 = vector.extract_strided_slice %186 {offsets = [0, 0], sizes = [4, 64], strides = [1, 1]} : vector<4x96xf32> to vector<4x64xf32>
    %189 = arith.addf %187, %188 : vector<4x64xf32>
    %190 = arith.negf %189 : vector<4x64xf32>
    %191 = math.exp %190 : vector<4x64xf32>
    %cst_25 = arith.constant 1.000000e+00 : f32
    %192 = vector.broadcast %cst_25 : f32 to vector<4x64xf32>
    %193 = arith.addf %192, %191 : vector<4x64xf32>
    %194 = arith.divf %192, %193 : vector<4x64xf32>
    %195 = vector.extract_strided_slice %194 {offsets = [0, 0], sizes = [4, 32], strides = [1, 1]} : vector<4x64xf32> to vector<4x32xf32>
    %196 = vector.extract_strided_slice %194 {offsets = [0, 32], sizes = [4, 32], strides = [1, 1]} : vector<4x64xf32> to vector<4x32xf32>
    %197 = vector.extract_strided_slice %182 {offsets = [0, 64], sizes = [4, 32], strides = [1, 1]} : vector<4x96xf32> to vector<4x32xf32>
    %198 = vector.extract_strided_slice %186 {offsets = [0, 64], sizes = [4, 32], strides = [1, 1]} : vector<4x96xf32> to vector<4x32xf32>
    %199 = arith.addf %198, %10 : vector<4x32xf32>
    %200 = arith.mulf %195, %199 : vector<4x32xf32>
    %201 = arith.addf %197, %200 : vector<4x32xf32>
    %202 = math.tanh %201 : vector<4x32xf32>
    %203 = arith.subf %178, %202 : vector<4x32xf32>
    %204 = arith.mulf %196, %203 : vector<4x32xf32>
    %205 = arith.addf %202, %204 : vector<4x32xf32>
    %206 = vector.extract_strided_slice %205 {offsets = [0, 0], sizes = [2, 32], strides = [1, 1]} : vector<4x32xf32> to vector<2x32xf32>
    %207 = vector.extract_strided_slice %205 {offsets = [2, 0], sizes = [2, 32], strides = [1, 1]} : vector<4x32xf32> to vector<2x32xf32>
    %208 = vector.extract_strided_slice %8 {offsets = [7, 0, 0], sizes = [1, 4, 96], strides = [1, 1, 1]} : vector<8x4x96xf32> to vector<1x4x96xf32>
    %209 = vector.shape_cast %208 : vector<1x4x96xf32> to vector<4x96xf32>
    %210 = arith.mulf %205, %15 : vector<4x32xf32>
    %211 = arith.mulf %205, %17 : vector<4x32xf32>
    %212 = tpu.concatenate %210, %211 in 1 : vector<4x32xf32>, vector<4x32xf32> -> vector<4x64xf32>
    %cst_26 = arith.constant dense<0.000000e+00> : vector<4x96xf32>
    %213 = tpu.matmul %212, %9, %cst_26 {dimension_numbers = #tpu.dot_dimension_numbers<[1], [0], [0], [1], [0, 0, 1, 1], [], []>} : vector<4x64xf32>, vector<64x96xf32>, vector<4x96xf32> -> vector<4x96xf32>
    %214 = vector.extract_strided_slice %209 {offsets = [0, 0], sizes = [4, 64], strides = [1, 1]} : vector<4x96xf32> to vector<4x64xf32>
    %215 = vector.extract_strided_slice %213 {offsets = [0, 0], sizes = [4, 64], strides = [1, 1]} : vector<4x96xf32> to vector<4x64xf32>
    %216 = arith.addf %214, %215 : vector<4x64xf32>
    %217 = arith.negf %216 : vector<4x64xf32>
    %218 = math.exp %217 : vector<4x64xf32>
    %cst_27 = arith.constant 1.000000e+00 : f32
    %219 = vector.broadcast %cst_27 : f32 to vector<4x64xf32>
    %220 = arith.addf %219, %218 : vector<4x64xf32>
    %221 = arith.divf %219, %220 : vector<4x64xf32>
    %222 = vector.extract_strided_slice %221 {offsets = [0, 0], sizes = [4, 32], strides = [1, 1]} : vector<4x64xf32> to vector<4x32xf32>
    %223 = vector.extract_strided_slice %221 {offsets = [0, 32], sizes = [4, 32], strides = [1, 1]} : vector<4x64xf32> to vector<4x32xf32>
    %224 = vector.extract_strided_slice %209 {offsets = [0, 64], sizes = [4, 32], strides = [1, 1]} : vector<4x96xf32> to vector<4x32xf32>
    %225 = vector.extract_strided_slice %213 {offsets = [0, 64], sizes = [4, 32], strides = [1, 1]} : vector<4x96xf32> to vector<4x32xf32>
    %226 = arith.addf %225, %10 : vector<4x32xf32>
    %227 = arith.mulf %222, %226 : vector<4x32xf32>
    %228 = arith.addf %224, %227 : vector<4x32xf32>
    %229 = math.tanh %228 : vector<4x32xf32>
    %230 = arith.subf %205, %229 : vector<4x32xf32>
    %231 = arith.mulf %223, %230 : vector<4x32xf32>
    %232 = arith.addf %229, %231 : vector<4x32xf32>
    %233 = vector.extract_strided_slice %232 {offsets = [0, 0], sizes = [2, 32], strides = [1, 1]} : vector<4x32xf32> to vector<2x32xf32>
    %234 = vector.extract_strided_slice %232 {offsets = [2, 0], sizes = [2, 32], strides = [1, 1]} : vector<4x32xf32> to vector<2x32xf32>
    %235 = vector.extract_strided_slice %232 {offsets = [0, 0], sizes = [2, 32], strides = [1, 1]} : vector<4x32xf32> to vector<2x32xf32>
    %c0_28 = arith.constant 0 : index
    %c0_29 = arith.constant 0 : index
    %c0_30 = arith.constant 0 : index
    %236 = vector.load %arg9[%c0_28, %c0_29, %c0_30] : memref<2x2x32xf32, #tpu.memory_space<vmem>>, vector<1x2x32xf32>
    %237 = vector.shape_cast %236 : vector<1x2x32xf32> to vector<2x32xf32>
    %238 = vector.shape_cast %235 : vector<2x32xf32> to vector<1x2x32xf32>
    tpu.vector_store %arg9[%c0_28, %c0_29, %c0_30], %238 {strides = array<i32>} : memref<2x2x32xf32, #tpu.memory_space<vmem>>, vector<1x2x32xf32>,
    %239 = vector.extract_strided_slice %232 {offsets = [2, 0], sizes = [2, 32], strides = [1, 1]} : vector<4x32xf32> to vector<2x32xf32>
    %c1 = arith.constant 1 : index
    %c0_31 = arith.constant 0 : index
    %c0_32 = arith.constant 0 : index
    %240 = vector.load %arg9[%c1, %c0_31, %c0_32] : memref<2x2x32xf32, #tpu.memory_space<vmem>>, vector<1x2x32xf32>
    %241 = vector.shape_cast %240 : vector<1x2x32xf32> to vector<2x32xf32>
    %242 = vector.shape_cast %239 : vector<2x32xf32> to vector<1x2x32xf32>
    tpu.vector_store %arg9[%c1, %c0_31, %c0_32], %242 {strides = array<i32>} : memref<2x2x32xf32, #tpu.memory_space<vmem>>, vector<1x2x32xf32>,
    %243 = tpu.concatenate %44, %71, %98, %125, %152, %179, %206, %233 in 0 : vector<2x32xf32>, vector<2x32xf32>, vector<2x32xf32>, vector<2x32xf32>, vector<2x32xf32>, vector<2x32xf32>, vector<2x32xf32>, vector<2x32xf32> -> vector<16x32xf32>
    %244 = tpu.concatenate %234, %207, %180, %153, %126, %99, %72, %45 in 0 : vector<2x32xf32>, vector<2x32xf32>, vector<2x32xf32>, vector<2x32xf32>, vector<2x32xf32>, vector<2x32xf32>, vector<2x32xf32>, vector<2x32xf32> -> vector<16x32xf32>
    %c0_33 = arith.constant 0 : index
    %c0_34 = arith.constant 0 : index
    %245 = vector.load %arg5[%c0_33, %c0_34] : memref<32x16xf32, #tpu.memory_space<vmem>>, vector<32x16xf32>
    %cst_35 = arith.constant dense<0.000000e+00> : vector<16x16xf32>
    %246 = tpu.matmul %243, %245, %cst_35 {dimension_numbers = #tpu.dot_dimension_numbers<[1], [0], [0], [1], [0, 0, 1, 1], [], []>} : vector<16x32xf32>, vector<32x16xf32>, vector<16x16xf32> -> vector<16x16xf32>
    %c0_36 = arith.constant 0 : index
    %c0_37 = arith.constant 0 : index
    %247 = vector.load %arg6[%c0_36, %c0_37] : memref<32x16xf32, #tpu.memory_space<vmem>>, vector<32x16xf32>
    %cst_38 = arith.constant dense<0.000000e+00> : vector<16x16xf32>
    %248 = tpu.matmul %244, %247, %cst_38 {dimension_numbers = #tpu.dot_dimension_numbers<[1], [0], [0], [1], [0, 0, 1, 1], [], []>} : vector<16x32xf32>, vector<32x16xf32>, vector<16x16xf32> -> vector<16x16xf32>
    %249 = arith.addf %246, %248 : vector<16x16xf32>
    %c0_39 = arith.constant 0 : index
    %c0_40 = arith.constant 0 : index
    %250 = vector.load %arg7[%c0_39, %c0_40] : memref<1x16xf32, #tpu.memory_space<vmem>>, vector<1x16xf32>
    %251 = vector.broadcast %250 : vector<1x16xf32> to vector<16x16xf32>
    %252 = arith.addf %249, %251 : vector<16x16xf32>
    %253 = vector.shape_cast %252 : vector<16x16xf32> to vector<8x2x16xf32>
    %c0_41 = arith.constant 0 : index
    %c0_42 = arith.constant 0 : index
    %c0_43 = arith.constant 0 : index
    %254 = vector.load %arg8[%c0_41, %c0_42, %c0_43] : memref<8x2x16xf32, #tpu.memory_space<vmem>>, vector<8x2x16xf32>
    tpu.vector_store %arg8[%c0_41, %c0_42, %c0_43], %253 {strides = array<i32>} : memref<8x2x16xf32, #tpu.memory_space<vmem>>, vector<8x2x16xf32>,
    return
  }
}

</mosaic_0001>

<bundles_post_ra>
// kernel: tpu_custom_call.1
= control target key start
LH: loop header
LB: loop body
LE: loop exit
PB: predicated region body
PF: predicated region fallthrough
CT: control target
= control target key end

     0   :  { %15 = vsyncpa [#allocation3], 0  ;;  %s2563_s0 = inlined_call_operand.vmem [shape: f32[8,4,32], index: 0, kind: input, shape index: {}]   ;;  %s2564_s1 = inlined_call_operand.hbm [shape: f32[32,96], index: 1, kind: input, shape index: {}]   ;;  %s2565_s2 = inlined_call_operand.hbm [shape: f32[4,96], index: 2, kind: input, shape index: {}]   ;;  %s2566_s3 = inlined_call_operand.vmem [shape: f32[64,96], index: 3, kind: input, shape index: {}]   ;;  %s2567_s4 = inlined_call_operand.hbm [shape: f32[4,32], index: 4, kind: input, shape index: {}]   ;;  %s2568_s5 = inlined_call_operand.vmem [shape: f32[32,16], index: 5, kind: input, shape index: {}]   ;;  %s2569_s6 = inlined_call_operand.vmem [shape: f32[32,16], index: 6, kind: input, shape index: {}]   ;;  %s2570_s7 = inlined_call_operand.vmem [shape: f32[1,16], index: 7, kind: input, shape index: {}]   ;;  %s2571_s8 = inlined_call_operand.hbm [shape: f32[8,2,16], index: 8, kind: output, shape index: {0}]   ;;  %s2572_s9 = inlined_call_operand.hbm [shape: f32[2,2,32], index: 9, kind: output, shape index: {1}]  }
   0x1   :  { %16 = vsyncpa [#allocation6], 0 }
   0x2   :  { %17 = vsyncpa [#allocation4], 0 }
   0x3   :  { %18 = vsyncpa [#allocation10], 0  ;;  %s2067_s30 = smov [#allocation5]   ;;  %s2068_s11 = smov [#allocation2]  }
   0x4   :  { %s39_s10 = sshll.u32 %s2067_s30, 4  ;;  %s26_s12 = sshll.u32 %s2068_s11, 4  ;;  %s40_s10 = int_to_ptr.vmem [resolvable:$true] %s39_s10  ;;  %s2132_s12 = int_to_ptr.vmem [resolvable:$true] %s26_s12 }
   0x5   :  { %s1949_s15 = scalar_lea.hbm %s2565_s2, 64 }
   0x6   :  { %p1950_p0 = scmp.ne.s32.totalorder %s2565_s2, %s1949_s15  ;;  %p1953_p1 = scmp.lt.u32.totalorder %s1949_s15, %s2565_s2 }
   0x8   :  { %p1955_p2 = pnand %p1953_p1, %p1950_p0 }
   0xa   :  { %1958 = shalt.err (!%p1955_p2)
}
   0xb   :  { %s1959_s20 = scalar_lea.vmem %s40_s10, 64  ;;  %p1964_p4 = scmp.lt.s32.totalorder %s40_s10, %s40_s10 }
   0xc   :  { %p1960_p3 = scmp.ne.s32.totalorder %s40_s10, %s1959_s20  ;;  %p1965_p5 = scmp.lt.s32.totalorder %s1959_s20, %s1959_s20 }
   0xe   :  { %p1966_p6 = por %p1965_p5, %p1964_p4 }
  0x10   :  { %p1967_p7 = pnand %p1966_p6, %p1960_p3 }
  0x12   :  { %1970 = shalt.err (!%p1967_p7)
}
  0x13   :  { %42 = dma.hbm_to_vmem [thread:$0]  %s2565_s2, 64, %s40_s10, [#allocation6]  }
  0x14   :  { %s1971_s25 = scalar_lea.hbm %s2564_s1, 512 }
  0x15   :  { %p1972_p8 = scmp.ne.s32.totalorder %s2564_s1, %s1971_s25  ;;  %p1975_p9 = scmp.lt.u32.totalorder %s1971_s25, %s2564_s1 }
  0x17   :  { %p1977_p10 = pnand %p1975_p9, %p1972_p8 }
  0x19   :  { %1980 = shalt.err (!%p1977_p10)
}
  0x1a   :  { %s1981_s30 = scalar_lea.vmem %s2132_s12, 512  ;;  %p1986_p12 = scmp.lt.s32.totalorder %s2132_s12, %s2132_s12 }
  0x1b   :  { %p1982_p11 = scmp.ne.s32.totalorder %s2132_s12, %s1981_s30  ;;  %p1987_p13 = scmp.lt.s32.totalorder %s1981_s30, %s1981_s30 }
  0x1d   :  { %p1988_p0 = por %p1987_p13, %p1986_p12 }
  0x1f   :  { %p1989_p1 = pnand %p1988_p0, %p1982_p11 }
  0x21   :  { %1992 = shalt.err (!%p1989_p1)
}
  0x22   :  { %s2069_s2 = smov 128   ;;  %s2070_s10 = smov 8  }
  0x23   :  { %32 = dma.hbm_to_vmem [thread:$0]  %s2564_s1, 512, %s2132_s12, [#allocation3], %s2069_s2, %s2069_s2, %s2070_s10  }
  0x24   :  { %s2071_s14 = smov [#allocation7]   ;;  %s1993_s18 = scalar_lea.hbm %s2567_s4, 64 }
  0x25   :  { %s51_s15 = sshll.u32 %s2071_s14, 4  ;;  %p1994_p2 = scmp.ne.s32.totalorder %s2567_s4, %s1993_s18  ;;  %s52_s15 = int_to_ptr.vmem [resolvable:$true] %s51_s15 }
  0x26   :  { %p1997_p3 = scmp.lt.u32.totalorder %s1993_s18, %s2567_s4 }
  0x28   :  { %p1999_p4 = pnand %p1997_p3, %p1994_p2 }
  0x2a   :  { %2002 = shalt.err (!%p1999_p4)
}
  0x2b   :  { %s2003_s23 = scalar_lea.vmem %s52_s15, 64  ;;  %p2008_p6 = scmp.lt.s32.totalorder %s52_s15, %s52_s15 }
  0x2c   :  { %p2004_p5 = scmp.ne.s32.totalorder %s52_s15, %s2003_s23  ;;  %p2009_p7 = scmp.lt.s32.totalorder %s2003_s23, %s2003_s23 }
  0x2e   :  { %p2010_p8 = por %p2009_p7, %p2008_p6 }
  0x30   :  { %p2011_p9 = pnand %p2010_p8, %p2004_p5 }
  0x32   :  { %2014 = shalt.err (!%p2011_p9)
}
  0x33   :  { %54 = dma.hbm_to_vmem [thread:$0]  %s2567_s4, 64, %s52_s15, [#allocation6]  }
  0x34   :  { %2059 = dma.done.wait [#allocation3], 512  }
  0x35   :  { %2060 = vsyncadd [#allocation3], 4294966784 }
  0x36   :  { %2061 = dma.done.wait [#allocation6], 128  }
  0x37   :  { %2062 = vsyncadd [#allocation6], 4294967168  ;;  %v2072_v0 = vmov 0.0|0.0   ;;  %vm2073_vm0 = vmmov 0   ;;  %v2074_v1 = vmov 0.0   ;;  %v218_v2 = vlaneseq  ;;  %v209_v4 = vld [vmem:[%s2566_s3] sm:$0xff] }
  0x38   :  { %1768 = vmatprep.subr.bf16.mxu1 %v2072_v0  ;;  %1602 = vmatprep.mubr.msk.f32.mxu1 %vm2073_vm0, %v2074_v1  ;;  %v210_v5 = vld [vmem:[%s2566_s3 + $0x8] sm:$0xff]  ;;  %v78_v6 = vld [vmem:[#allocation2] sm:$0xff]  ;;  %v211_v9 = vld [vmem:[%s2566_s3 + $0x10] sm:$0xff]  ;;  %vm94_vm2 = vcmask 261120   ;;  %s2075_s16 = smov 64   ;;  %vm227_vm3 = vcmask 523264  }
  0x39   :  { %v2178_v3 = vshrl.u32 %v218_v2, 7  ;;  %v2186_v7 = vpack.c.bf16 %v210_v5, %v209_v4  ;;  %v79_v8 = vld [vmem:[#allocation2 + $0x8] sm:$0xff]  ;;  %v212_v10 = vld [vmem:[%s2566_s3 + $0x18] sm:$0xff]  ;;  %v80_v12 = vld [vmem:[#allocation2 + $0x10] sm:$0xff]  ;;  %s2077_s25 = smov 32   ;;  %vm1159_vm4 = vcmask 1041408  }
  0x3a   :  { %v1760_v11 = vpack.c.bf16 %v79_v8, %v78_v6  ;;  %v81_v13 = vld [vmem:[#allocation2 + $0x18] sm:$0xff]  ;;  %v213_v14 = vld [vmem:[%s2566_s3 + $0x20] sm:$0xff]  ;;  %v2199_v15 = vpack.c.bf16 %v212_v10, %v211_v9  ;;  %v214_v17 = vld [vmem:[%s2566_s3 + $0x28] sm:$0xff]  ;;  %vm1161_vm5 = vcmask 1043456   ;;  %vm1163_vm6 = vcmask 1045504  }
  0x3b   :  { %vm220_vm1 = vcmp.lt.s32.totalorder %v2178_v3, 2  ;;  %1770 = vmatpush3.bf16.msra.mxu1 %v2186_v7  ;;  %v1764_v16 = vpack.c.bf16 %v81_v13, %v80_v12  ;;  %v1897_v18 = vld [vmem:[%s2563_s0] sm:$0xff]   ;;  %v2213_v21 = vpack.c.bf16 %v214_v17, %v213_v14  ;;  %v1898_v23 = vld [vmem:[%s2563_s0 + $0x8] sm:$0xff]   ;;  %v215_v24 = vld [vmem:[%s2566_s3 + $0x30] sm:$0xff]  ;;  %vm1137_vm7 = vcmask 254976  }
  0x3c   :  { %1771 = vmatprep.subr.bf16.mxu1 %v2072_v0  ;;  %1761 = vmatprep.subr.bf16.mxu0 %v1760_v11  ;;  %v2209_v19 = vsel %vm220_vm1, 1.0, %v2074_v1  ;;  %v217_v20 = vld [vmem:[#allocation7] sm:$0xf]  ;;  %v216_v25 = vld [vmem:[%s2566_s3 + $0x38] sm:$0xff]  ;;  %v2265_v36 = vld [vmem:[#allocation5] sm:$0xf] }
  0x3d   :  { %1763 = vmatpush3.bf16.msra.mxu0 %v1760_v11  ;;  %1580 = vmatprep.mubr.msk.f32.mxu0 %vm94_vm2, %v1897_v18  ;;  %v2216_v22 = vsub.f32 1.0, %v2209_v19  ;;  %v2231_v26 = vpack.c.bf16 %v216_v25, %v215_v24  ;;  %v224_v27 = vmul.f32 0.0, %v2209_v19  ;;  %s2076_s3 = smov 96   ;;  %v1899_v49 = vld [vmem:[%s2563_s0 + $0x10] sm:$0xff]   ;;  %v1900_v50 = vld [vmem:[%s2563_s0 + $0x18] sm:$0xff]   ;;  %vm1140_vm8 = vcmask 257026  }
  0x3e   :  { %1765 = vmatprep.subr.bf16.mxu0 %v1764_v16  ;;  %309 = vrot.lane.b32.xlu0 %v217_v20, %s2075_s16 }
  0x3f   :  { %1773 = vmatpush3.bf16.msra.mxu1 %v2199_v15  ;;  %v225_v28 = vmul.f32 0.0, %v2216_v22 }
  0x40   :  { %1774 = vmatprep.subr.bf16.mxu1 %v2072_v0 }
  0x41   :  { %1767 = vmatpush3.bf16.msra.mxu0 %v1764_v16  ;;  %v226_v29 = vsel %vm94_vm2, %v224_v27, %v225_v28 }
  0x42   :  { %1780 = vmatprep.subr.bf16.mxu0 %v2072_v0 }
  0x43   :  { %1776 = vmatpush3.bf16.msra.mxu1 %v2213_v21 }
  0x44   :  { %1777 = vmatprep.subr.bf16.mxu1 %v2072_v0  ;;  %1581 = vmatmul.mubr.msk.f32.vlgmr.msra.gmra.mrb[0].mxu0 %vm94_vm2, %v1898_v23 }
  0x45   :  { %1782 = vmatpush3.bf16.msra.mxu0 %v2186_v7  ;;  %1583 = vmatprep.mubr.msk.f32.mxu0 %vm94_vm2, %v1899_v49 }
  0x46   :  { %1783 = vmatprep.subr.bf16.mxu0 %v2072_v0 }
  0x47   :  { %1779 = vmatpush3.bf16.msra.mxu1 %v2231_v26 }
  0x48   :  { %1792 = vmatprep.subr.bf16.mxu1 %v2072_v0  ;;  %1584 = vmatmul.mubr.msk.f32.gmra.mrb[2].mxu0 %vm94_vm2, %v1900_v50 }
  0x49   :  { %1785 = vmatpush3.bf16.msra.mxu0 %v2199_v15  ;;  %1621 = vmatprep.mubr.msk.f32.mxu0 %vm2073_vm0, %v2074_v1 }
  0x4a   :  { %1603 = vmatmul.mubr.msk.f32.vlgmr.msra.gmra.mrb[0].mxu1 %vm227_vm3, %v226_v29  ;;  %1786 = vmatprep.subr.bf16.mxu0 %v2072_v0 }
  0x4b   :  { %1794 = vmatpush3.bf16.msra.mxu1 %v2186_v7  ;;  %1640 = vmatprep.mubr.msk.f32.mxu1 %vm2073_vm0, %v2074_v1 }
  0x4c   :  { %1795 = vmatprep.subr.bf16.mxu1 %v2072_v0 }
  0x4d   :  { %1788 = vmatpush3.bf16.msra.mxu0 %v2213_v21 }
  0x4e   :  { %1789 = vmatprep.subr.bf16.mxu0 %v2072_v0 }
  0x4f   :  { %1797 = vmatpush3.bf16.msra.mxu1 %v2199_v15 }
  0x50   :  { %1798 = vmatprep.subr.bf16.mxu1 %v2072_v0 }
  0x51   :  { %1791 = vmatpush3.bf16.msra.mxu0 %v2231_v26 }
  0x52   :  { %1804 = vmatprep.subr.bf16.mxu0 %v2072_v0 }
  0x53   :  { %1800 = vmatpush3.bf16.msra.mxu1 %v2213_v21 }
  0x54   :  { %1801 = vmatprep.subr.bf16.mxu1 %v2072_v0 }
  0x57   :  { %1803 = vmatpush3.bf16.msra.mxu1 %v2231_v26 }
  0x58   :  { %1816 = vmatprep.subr.bf16.mxu1 %v2072_v0 }
  0xb0   :  { %v2261_v32 = vpop.permute.xlu0 %309 }
 0x117   :  { %v2259_v30 = vpop.f32.mrb[0].mxu0 }
 0x118   :  { %v169_v31 = vpop.f32.mrb[1].mxu0 }
 0x119   :  { %v201_v37 = vadd.f32 %v2265_v36, %v169_v31  ;;  %v192_v4 = vcombine.high %v169_v31, %v169_v31 }
 0x11b   :  { %v2289_v57 = vpop.f32.mrb[2].mxu0  ;;  %v202_v5 = vadd.f32 %v2265_v36, %v192_v4  ;;  %v193_v4 = vcombine.high %v2259_v30, %v2259_v30 }
 0x11c   :  { %v2291_v58 = vpop.f32.mrb[3].mxu0 }
 0x11d   :  { %v297_v33 = vpop.f32.mrb[0].mxu1 }
 0x11e   :  { %v312_v34 = vadd.f32 %v2261_v32, %v297_v33  ;;  %v1604_v35 = vpop.f32.mrb[1].mxu1  ;;  %v301_v38 = vadd.f32 %v297_v33, %v201_v37 }
 0x120   :  { %314 = vrot.lane.b32.xlu0 %v312_v34, %s2075_s16  ;;  %v1460_v39 = vmul.f32 -1.442695, %v301_v38  ;;  %v203_v38 = vadd.f32 %v2259_v30, %v2265_v36 }
 0x122   :  { %1901 = vpow2.f32 %v1460_v39 }
 0x12c   :  { %v1902_v40 = vpop.eup %1901 }
 0x12d   :  { %v305_v41 = vadd.f32 1.0, %v1902_v40 }
 0x12f   :  { %1903 = vrcp.f32 %v305_v41 }
 0x139   :  { %v1904_v42 = vpop.eup %1903 }
 0x192   :  { %v315_v43 = vpop.permute.xlu0 %314 }
 0x193   :  { %v317_v44 = vmul.f32 %v1904_v42, %v315_v43 }
 0x195   :  { %319 = vrot.lane.b32.xlu1 %v317_v44, %s2075_s16 }
 0x207   :  { %v320_v45 = vpop.permute.xlu1 %319 }
 0x208   :  { %v322_v46 = vadd.f32 %v320_v45, %v201_v37 }
 0x20a   :  { %1905 = vtanh.f32 %v322_v46 }
 0x214   :  { %v1906_v47 = vpop.eup %1905 }
 0x215   :  { %v324_v48 = vsub.f32 0.0, %v1906_v47 }
 0x217   :  { %326 = vrot.lane.b32.xlu1 %v324_v48, %s2076_s3 }
 0x289   :  { %v327_v51 = vpop.permute.xlu1 %326 }
 0x28a   :  { %v329_v52 = vmul.f32 %v1904_v42, %v327_v51 }
 0x28c   :  { %331 = vrot.lane.b32.xlu0 %v329_v52, %s2077_s25 }
 0x2fe   :  { %v332_v53 = vpop.permute.xlu0 %331 }
 0x2ff   :  { %v2281_v54 = vadd.f32 %v1906_v47, %v332_v53 }
 0x301   :  { %v336_v55 = vmul.f32 %v2281_v54, %v2216_v22  ;;  %v335_v56 = vmul.f32 %v2209_v19, %v2281_v54 }
 0x303   :  { %342 = vrot.lane.b32.xlu0 %v336_v55, %s2076_s3  ;;  %338 = vrot.lane.b32.xlu1 %v335_v56, %s2075_s16 }
 0x375   :  { %v343_v59 = vpop.permute.xlu0 %342  ;;  %v339_v60 = vpop.permute.xlu1 %338 }
 0x376   :  { %v345_v61 = vsel %vm94_vm2, %v339_v60, %v343_v59 }
 0x377   :  { %1622 = vmatmul.mubr.msk.f32.vlgmr.msra.gmra.mrb[4].mxu0 %vm227_vm3, %v345_v61 }
 0x378   :  { %1806 = vmatpush3.bf16.msra.mxu0 %v2186_v7  ;;  %1659 = vmatprep.mubr.msk.f32.mxu0 %vm2073_vm0, %v2074_v1 }
 0x379   :  { %1807 = vmatprep.subr.bf16.mxu0 %v2072_v0 }
 0x37c   :  { %1809 = vmatpush3.bf16.msra.mxu0 %v2199_v15 }
 0x37d   :  { %1810 = vmatprep.subr.bf16.mxu0 %v2072_v0 }
 0x380   :  { %1812 = vmatpush3.bf16.msra.mxu0 %v2213_v21 }
 0x381   :  { %1813 = vmatprep.subr.bf16.mxu0 %v2072_v0 }
 0x384   :  { %1815 = vmatpush3.bf16.msra.mxu0 %v2231_v26 }
 0x385   :  { %1828 = vmatprep.subr.bf16.mxu0 %v2072_v0 }
 0x44a   :  { %v415_v62 = vpop.f32.mrb[4].mxu0 }
 0x44b   :  { %v426_v63 = vadd.f32 %v415_v62, %v2261_v32  ;;  %v1623_v2 = vpop.f32.mrb[5].mxu0  ;;  %v419_v6 = vadd.f32 %v415_v62, %v202_v5 }
 0x44d   :  { %428 = vrot.lane.b32.xlu1 %v426_v63, %s2075_s16  ;;  %v1462_v8 = vmul.f32 -1.442695, %v419_v6 }
 0x44f   :  { %1907 = vpow2.f32 %v1462_v8 }
 0x459   :  { %v1908_v9 = vpop.eup %1907 }
 0x45a   :  { %v423_v10 = vadd.f32 1.0, %v1908_v9 }
 0x45c   :  { %1909 = vrcp.f32 %v423_v10 }
 0x466   :  { %v1910_v11 = vpop.eup %1909 }
 0x4bf   :  { %v429_v12 = vpop.permute.xlu1 %428 }
 0x4c0   :  { %v431_v13 = vmul.f32 %v1910_v11, %v429_v12 }
 0x4c2   :  { %433 = vrot.lane.b32.xlu0 %v431_v13, %s2075_s16 }
 0x534   :  { %v434_v14 = vpop.permute.xlu0 %433 }
 0x535   :  { %v436_v16 = vadd.f32 %v434_v14, %v202_v5  ;;  %v204_v5 = vadd.f32 %v2265_v36, %v193_v4 }
 0x537   :  { %1911 = vtanh.f32 %v436_v16 }
 0x541   :  { %v1912_v17 = vpop.eup %1911 }
 0x542   :  { %v438_v18 = vsub.f32 %v2281_v54, %v1912_v17 }
 0x544   :  { %440 = vrot.lane.b32.xlu1 %v438_v18, %s2076_s3 }
 0x5b6   :  { %v441_v20 = vpop.permute.xlu1 %440 }
 0x5b7   :  { %v443_v23 = vmul.f32 %v1910_v11, %v441_v20 }
 0x5b9   :  { %445 = vrot.lane.b32.xlu0 %v443_v23, %s2077_s25 }
 0x62b   :  { %v446_v24 = vpop.permute.xlu0 %445 }
 0x62c   :  { %v2312_v25 = vadd.f32 %v1912_v17, %v446_v24 }
 0x62e   :  { %v450_v27 = vmul.f32 %v2312_v25, %v2216_v22  ;;  %v449_v28 = vmul.f32 %v2209_v19, %v2312_v25 }
 0x630   :  { %456 = vrot.lane.b32.xlu0 %v450_v27, %s2076_s3  ;;  %452 = vrot.lane.b32.xlu1 %v449_v28, %s2075_s16 }
 0x6a2   :  { %v457_v29 = vpop.permute.xlu0 %456  ;;  %v453_v31 = vpop.permute.xlu1 %452 }
 0x6a3   :  { %v459_v33 = vsel %vm94_vm2, %v453_v31, %v457_v29 }
 0x6a4   :  { %1641 = vmatmul.mubr.msk.f32.vlgmr.msra.gmra.mrb[2].mxu1 %vm227_vm3, %v459_v33 }
 0x6a5   :  { %1818 = vmatpush3.bf16.msra.mxu1 %v2186_v7  ;;  %1678 = vmatprep.mubr.msk.f32.mxu1 %vm2073_vm0, %v2074_v1 }
 0x6a6   :  { %1819 = vmatprep.subr.bf16.mxu1 %v2072_v0 }
 0x6a9   :  { %1821 = vmatpush3.bf16.msra.mxu1 %v2199_v15 }
 0x6aa   :  { %1822 = vmatprep.subr.bf16.mxu1 %v2072_v0 }
 0x6ad   :  { %1824 = vmatpush3.bf16.msra.mxu1 %v2213_v21 }
 0x6ae   :  { %1825 = vmatprep.subr.bf16.mxu1 %v2072_v0 }
 0x6b1   :  { %1827 = vmatpush3.bf16.msra.mxu1 %v2231_v26 }
 0x6b2   :  { %1840 = vmatprep.subr.bf16.mxu1 %v2072_v0 }
 0x777   :  { %v529_v34 = vpop.f32.mrb[2].mxu1 }
 0x778   :  { %v540_v35 = vadd.f32 %v529_v34, %v2261_v32  ;;  %v1642_v37 = vpop.f32.mrb[3].mxu1  ;;  %v533_v39 = vadd.f32 %v529_v34, %v203_v38 }
 0x77a   :  { %542 = vrot.lane.b32.xlu1 %v540_v35, %s2075_s16  ;;  %v1464_v40 = vmul.f32 -1.442695, %v533_v39 }
 0x77c   :  { %1913 = vpow2.f32 %v1464_v40 }
 0x786   :  { %v1914_v41 = vpop.eup %1913 }
 0x787   :  { %v537_v42 = vadd.f32 1.0, %v1914_v41 }
 0x789   :  { %1915 = vrcp.f32 %v537_v42 }
 0x793   :  { %v1916_v43 = vpop.eup %1915 }
 0x7ec   :  { %v543_v44 = vpop.permute.xlu1 %542 }
 0x7ed   :  { %v545_v45 = vmul.f32 %v1916_v43, %v543_v44 }
 0x7ef   :  { %547 = vrot.lane.b32.xlu0 %v545_v45, %s2075_s16 }
 0x861   :  { %v548_v46 = vpop.permute.xlu0 %547 }
 0x862   :  { %v550_v47 = vadd.f32 %v548_v46, %v203_v38  ;;  %v205_v38 = vadd.f32 %v2265_v36, %v2291_v58 }
 0x864   :  { %1917 = vtanh.f32 %v550_v47 }
 0x86e   :  { %v1918_v48 = vpop.eup %1917 }
 0x86f   :  { %v552_v49 = vsub.f32 %v2312_v25, %v1918_v48 }
 0x871   :  { %554 = vrot.lane.b32.xlu1 %v552_v49, %s2076_s3 }
 0x8e3   :  { %v555_v50 = vpop.permute.xlu1 %554 }
 0x8e4   :  { %v557_v51 = vmul.f32 %v1916_v43, %v555_v50 }
 0x8e6   :  { %559 = vrot.lane.b32.xlu0 %v557_v51, %s2077_s25 }
 0x958   :  { %v560_v52 = vpop.permute.xlu0 %559 }
 0x959   :  { %v2340_v53 = vadd.f32 %v1918_v48, %v560_v52 }
 0x95b   :  { %v564_v55 = vmul.f32 %v2340_v53, %v2216_v22  ;;  %v563_v56 = vmul.f32 %v2209_v19, %v2340_v53 }
 0x95d   :  { %570 = vrot.lane.b32.xlu0 %v564_v55, %s2076_s3  ;;  %566 = vrot.lane.b32.xlu1 %v563_v56, %s2075_s16 }
 0x9cf   :  { %v571_v59 = vpop.permute.xlu0 %570  ;;  %v567_v60 = vpop.permute.xlu1 %566 }
 0x9d0   :  { %v573_v61 = vsel %vm94_vm2, %v567_v60, %v571_v59 }
 0x9d1   :  { %1660 = vmatmul.mubr.msk.f32.vlgmr.msra.gmra.mrb[6].mxu0 %vm227_vm3, %v573_v61 }
 0x9d2   :  { %1830 = vmatpush3.bf16.msra.mxu0 %v2186_v7  ;;  %1697 = vmatprep.mubr.msk.f32.mxu0 %vm2073_vm0, %v2074_v1 }
 0x9d3   :  { %1831 = vmatprep.subr.bf16.mxu0 %v2072_v0 }
 0x9d6   :  { %1833 = vmatpush3.bf16.msra.mxu0 %v2199_v15 }
 0x9d7   :  { %1834 = vmatprep.subr.bf16.mxu0 %v2072_v0 }
 0x9da   :  { %1836 = vmatpush3.bf16.msra.mxu0 %v2213_v21 }
 0x9db   :  { %1837 = vmatprep.subr.bf16.mxu0 %v2072_v0 }
 0x9de   :  { %1839 = vmatpush3.bf16.msra.mxu0 %v2231_v26 }
 0x9df   :  { %1852 = vmatprep.subr.bf16.mxu0 %v2072_v0 }
 0xaa4   :  { %v643_v62 = vpop.f32.mrb[6].mxu0 }
 0xaa5   :  { %v654_v63 = vadd.f32 %v643_v62, %v2261_v32  ;;  %v1661_v2 = vpop.f32.mrb[7].mxu0  ;;  %v647_v6 = vadd.f32 %v643_v62, %v204_v5 }
 0xaa7   :  { %656 = vrot.lane.b32.xlu1 %v654_v63, %s2075_s16  ;;  %v1466_v8 = vmul.f32 -1.442695, %v647_v6 }
 0xaa9   :  { %1919 = vpow2.f32 %v1466_v8 }
 0xab3   :  { %v1920_v9 = vpop.eup %1919 }
 0xab4   :  { %v651_v10 = vadd.f32 1.0, %v1920_v9 }
 0xab6   :  { %1921 = vrcp.f32 %v651_v10 }
 0xac0   :  { %v1922_v11 = vpop.eup %1921 }
 0xb19   :  { %v657_v12 = vpop.permute.xlu1 %656 }
 0xb1a   :  { %v659_v13 = vmul.f32 %v1922_v11, %v657_v12 }
 0xb1c   :  { %661 = vrot.lane.b32.xlu0 %v659_v13, %s2075_s16 }
 0xb8e   :  { %v662_v14 = vpop.permute.xlu0 %661 }
 0xb8f   :  { %v664_v16 = vadd.f32 %v662_v14, %v204_v5 }
 0xb91   :  { %1923 = vtanh.f32 %v664_v16 }
 0xb9b   :  { %v1924_v17 = vpop.eup %1923 }
 0xb9c   :  { %v666_v18 = vsub.f32 %v2340_v53, %v1924_v17 }
 0xb9e   :  { %668 = vrot.lane.b32.xlu1 %v666_v18, %s2076_s3 }
 0xc10   :  { %v669_v30 = vpop.permute.xlu1 %668 }
 0xc11   :  { %v671_v20 = vmul.f32 %v1922_v11, %v669_v30 }
 0xc13   :  { %673 = vrot.lane.b32.xlu0 %v671_v20, %s2077_s25 }
 0xc85   :  { %v674_v23 = vpop.permute.xlu0 %673 }
 0xc86   :  { %v2369_v24 = vadd.f32 %v1924_v17, %v674_v23 }
 0xc88   :  { %v678_v27 = vmul.f32 %v2369_v24, %v2216_v22  ;;  %v677_v28 = vmul.f32 %v2209_v19, %v2369_v24 }
 0xc8a   :  { %684 = vrot.lane.b32.xlu0 %v678_v27, %s2076_s3  ;;  %680 = vrot.lane.b32.xlu1 %v677_v28, %s2075_s16 }
 0xcfc   :  { %v685_v29 = vpop.permute.xlu0 %684  ;;  %v681_v31 = vpop.permute.xlu1 %680 }
 0xcfd   :  { %v687_v33 = vsel %vm94_vm2, %v681_v31, %v685_v29  ;;  %v207_v31 = vadd.f32 %v2289_v57, %v2265_v36 }
 0xcfe   :  { %1679 = vmatmul.mubr.msk.f32.vlgmr.msra.gmra.mrb[4].mxu1 %vm227_vm3, %v687_v33 }
 0xcff   :  { %1842 = vmatpush3.bf16.msra.mxu1 %v2186_v7  ;;  %1716 = vmatprep.mubr.msk.f32.mxu1 %vm2073_vm0, %v2074_v1 }
 0xd00   :  { %1843 = vmatprep.subr.bf16.mxu1 %v2072_v0 }
 0xd03   :  { %1845 = vmatpush3.bf16.msra.mxu1 %v2199_v15 }
 0xd04   :  { %1846 = vmatprep.subr.bf16.mxu1 %v2072_v0 }
 0xd07   :  { %1848 = vmatpush3.bf16.msra.mxu1 %v2213_v21 }
 0xd08   :  { %1849 = vmatprep.subr.bf16.mxu1 %v2072_v0 }
 0xd0b   :  { %1851 = vmatpush3.bf16.msra.mxu1 %v2231_v26 }
 0xdd1   :  { %v757_v34 = vpop.f32.mrb[4].mxu1 }
 0xdd2   :  { %v768_v35 = vadd.f32 %v757_v34, %v2261_v32  ;;  %v1680_v37 = vpop.f32.mrb[5].mxu1  ;;  %v761_v39 = vadd.f32 %v757_v34, %v205_v38 }
 0xdd4   :  { %770 = vrot.lane.b32.xlu1 %v768_v35, %s2075_s16  ;;  %v1468_v40 = vmul.f32 -1.442695, %v761_v39 }
 0xdd6   :  { %1925 = vpow2.f32 %v1468_v40 }
 0xde0   :  { %v1926_v41 = vpop.eup %1925 }
 0xde1   :  { %v765_v42 = vadd.f32 1.0, %v1926_v41 }
 0xde3   :  { %1927 = vrcp.f32 %v765_v42 }
 0xded   :  { %v1928_v43 = vpop.eup %1927 }
 0xe46   :  { %v771_v44 = vpop.permute.xlu1 %770 }
 0xe47   :  { %v773_v45 = vmul.f32 %v1928_v43, %v771_v44 }
 0xe49   :  { %775 = vrot.lane.b32.xlu0 %v773_v45, %s2075_s16 }
 0xebb   :  { %v776_v46 = vpop.permute.xlu0 %775 }
 0xebc   :  { %v778_v47 = vadd.f32 %v776_v46, %v205_v38 }
 0xebe   :  { %1929 = vtanh.f32 %v778_v47 }
 0xec8   :  { %v1930_v48 = vpop.eup %1929 }
 0xec9   :  { %v780_v49 = vsub.f32 %v2369_v24, %v1930_v48 }
 0xecb   :  { %782 = vrot.lane.b32.xlu1 %v780_v49, %s2076_s3 }
 0xf3d   :  { %v783_v50 = vpop.permute.xlu1 %782 }
 0xf3e   :  { %v785_v51 = vmul.f32 %v1928_v43, %v783_v50 }
 0xf40   :  { %787 = vrot.lane.b32.xlu0 %v785_v51, %s2077_s25 }
 0xfb2   :  { %v788_v52 = vpop.permute.xlu0 %787 }
 0xfb3   :  { %v2396_v55 = vadd.f32 %v1930_v48, %v788_v52 }
 0xfb5   :  { %v792_v56 = vmul.f32 %v2396_v55, %v2216_v22  ;;  %v791_v59 = vmul.f32 %v2209_v19, %v2396_v55 }
 0xfb7   :  { %798 = vrot.lane.b32.xlu0 %v792_v56, %s2076_s3  ;;  %794 = vrot.lane.b32.xlu1 %v791_v59, %s2075_s16 }
0x1029   :  { %v799_v60 = vpop.permute.xlu0 %798  ;;  %v795_v61 = vpop.permute.xlu1 %794 }
0x102a   :  { %v801_v62 = vsel %vm94_vm2, %v795_v61, %v799_v60 }
0x102b   :  { %1698 = vmatmul.mubr.msk.f32.vlgmr.msra.gmra.mrb[8].mxu0 %vm227_vm3, %v801_v62 }
0x102c   :  { %1854 = vmatpush3.bf16.msra.mxu0 %v2186_v7  ;;  %1735 = vmatprep.mubr.msk.f32.mxu0 %vm2073_vm0, %v2074_v1  ;;  %v194_v1 = vcombine.high %v2291_v58, %v2291_v58 }
0x102d   :  { %1855 = vmatprep.subr.bf16.mxu0 %v2072_v0 }
0x102e   :  { %v206_v7 = vadd.f32 %v2265_v36, %v194_v1 }
0x1030   :  { %1857 = vmatpush3.bf16.msra.mxu0 %v2199_v15 }
0x1031   :  { %1858 = vmatprep.subr.bf16.mxu0 %v2072_v0 }
0x1034   :  { %1860 = vmatpush3.bf16.msra.mxu0 %v2213_v21 }
0x1035   :  { %1861 = vmatprep.subr.bf16.mxu0 %v2072_v0 }
0x1038   :  { %1863 = vmatpush3.bf16.msra.mxu0 %v2231_v26 }
0x10fe   :  { %v871_v63 = vpop.f32.mrb[8].mxu0 }
0x10ff   :  { %v882_v2 = vadd.f32 %v871_v63, %v2261_v32  ;;  %v1699_v4 = vpop.f32.mrb[9].mxu0  ;;  %v875_v15 = vadd.f32 %v871_v63, %v206_v7 }
0x1101   :  { %884 = vrot.lane.b32.xlu1 %v882_v2, %s2075_s16  ;;  %v1470_v5 = vmul.f32 -1.442695, %v875_v15 }
0x1103   :  { %1931 = vpow2.f32 %v1470_v5 }
0x110d   :  { %v1932_v6 = vpop.eup %1931 }
0x110e   :  { %v879_v21 = vadd.f32 1.0, %v1932_v6 }
0x1110   :  { %1933 = vrcp.f32 %v879_v21 }
0x111a   :  { %v1934_v0 = vpop.eup %1933 }
0x1173   :  { %v885_v8 = vpop.permute.xlu1 %884 }
0x1174   :  { %v887_v26 = vmul.f32 %v1934_v0, %v885_v8 }
0x1176   :  { %889 = vrot.lane.b32.xlu0 %v887_v26, %s2075_s16  ;;  %v1143_v26 = vrot.slane %v2312_v25, 6  ;;  %v1186_v25 = vld [vmem:[%s2569_s6 + $0x10] sm:$0xff] }
0x11e8   :  { %v890_v9 = vpop.permute.xlu0 %889 }
0x11e9   :  { %v892_v10 = vadd.f32 %v890_v9, %v206_v7 }
0x11eb   :  { %1935 = vtanh.f32 %v892_v10  ;;  %v1172_v10 = vcombine.low %v2281_v54, %v2281_v54 }
0x11f5   :  { %v1936_v11 = vpop.eup %1935 }
0x11f6   :  { %v894_v12 = vsub.f32 %v2396_v55, %v1936_v11 }
0x11f8   :  { %896 = vrot.lane.b32.xlu1 %v894_v12, %s2076_s3 }
0x126a   :  { %v897_v58 = vpop.permute.xlu1 %896 }
0x126b   :  { %v899_v13 = vmul.f32 %v1934_v0, %v897_v58 }
0x126d   :  { %901 = vrot.lane.b32.xlu0 %v899_v13, %s2077_s25  ;;  %v1187_v13 = vld [vmem:[%s2569_s6 + $0x18] sm:$0xff] }
0x12df   :  { %v902_v14 = vpop.permute.xlu0 %901 }
0x12e0   :  { %v2424_v16 = vadd.f32 %v1936_v11, %v902_v14  ;;  %v1185_v11 = vld [vmem:[%s2569_s6 + $0x8] sm:$0xff]  ;;  %v1868_v14 = vpack.c.bf16 %v1187_v13, %v1186_v25 }
0x12e2   :  { %v906_v17 = vmul.f32 %v2424_v16, %v2216_v22  ;;  %v905_v18 = vmul.f32 %v2209_v19, %v2424_v16 }
0x12e4   :  { %912 = vrot.lane.b32.xlu0 %v906_v17, %s2076_s3  ;;  %908 = vrot.lane.b32.xlu1 %v905_v18, %s2075_s16  ;;  %v1180_v17 = vld [vmem:[%s2568_s5] sm:$0xff]  ;;  %v1181_v18 = vld [vmem:[%s2568_s5 + $0x8] sm:$0xff] }
0x1356   :  { %v913_v30 = vpop.permute.xlu0 %912  ;;  %v909_v20 = vpop.permute.xlu1 %908 }
0x1357   :  { %v915_v23 = vsel %vm94_vm2, %v909_v20, %v913_v30  ;;  %v1872_v30 = vpack.c.bf16 %v1181_v18, %v1180_v17  ;;  %v1152_v20 = vrot.slane %v2424_v16, 6 }
0x1358   :  { %1717 = vmatmul.mubr.msk.f32.vlgmr.msra.gmra.mrb[6].mxu1 %vm227_vm3, %v915_v23 }
0x142b   :  { %v985_v27 = vpop.f32.mrb[6].mxu1 }
0x142c   :  { %v996_v28 = vadd.f32 %v985_v27, %v2261_v32  ;;  %v1718_v29 = vpop.f32.mrb[7].mxu1  ;;  %v989_v33 = vadd.f32 %v985_v27, %v207_v31 }
0x142e   :  { %998 = vrot.lane.b32.xlu1 %v996_v28, %s2075_s16  ;;  %v1472_v34 = vmul.f32 -1.442695, %v989_v33 }
0x1430   :  { %1937 = vpow2.f32 %v1472_v34 }
0x143a   :  { %v1938_v35 = vpop.eup %1937 }
0x143b   :  { %v993_v37 = vadd.f32 1.0, %v1938_v35  ;;  %v1169_v35 = vcombine.low %v2396_v55, %v2396_v55 }
0x143d   :  { %1939 = vrcp.f32 %v993_v37 }
0x1447   :  { %v1940_v38 = vpop.eup %1939 }
0x14a0   :  { %v999_v39 = vpop.permute.xlu1 %998 }
0x14a1   :  { %v1001_v40 = vmul.f32 %v1940_v38, %v999_v39 }
0x14a3   :  { %1003 = vrot.lane.b32.xlu0 %v1001_v40, %s2075_s16  ;;  %v1160_v40 = vsel %vm1159_vm4, %v2281_v54, %v1143_v26 }
0x1515   :  { %v1004_v41 = vpop.permute.xlu0 %1003 }
0x1516   :  { %v1006_v42 = vadd.f32 %v1004_v41, %v207_v31  ;;  %v1165_v31 = vsel %vm1159_vm4, %v2396_v55, %v1152_v20 }
0x1518   :  { %1941 = vtanh.f32 %v1006_v42  ;;  %v1182_v42 = vld [vmem:[%s2568_s5 + $0x10] sm:$0xff] }
0x1522   :  { %v1942_v43 = vpop.eup %1941 }
0x1523   :  { %v1008_v44 = vsub.f32 %v2424_v16, %v1942_v43 }
0x1525   :  { %1010 = vrot.lane.b32.xlu1 %v1008_v44, %s2076_s3 }
0x1597   :  { %v1011_v45 = vpop.permute.xlu1 %1010 }
0x1598   :  { %v1013_v46 = vmul.f32 %v1940_v38, %v1011_v45  ;;  %v1146_v38 = vcombine.low %v2340_v53, %v2340_v53 }
0x159a   :  { %1015 = vrot.lane.b32.xlu0 %v1013_v46, %s2077_s25  ;;  %v1162_v41 = vsel %vm1161_vm5, %v1160_v40, %v1146_v38 }
0x160c   :  { %v1016_v47 = vpop.permute.xlu0 %1015 }
0x160d   :  { %v2442_v48 = vadd.f32 %v1942_v43, %v1016_v47 }
0x160f   :  { %v1020_v49 = vmul.f32 %v2442_v48, %v2216_v22  ;;  %v1019_v50 = vmul.f32 %v2209_v19, %v2442_v48  ;;  %v195_v22 = vcombine.high %v2289_v57, %v2289_v57  ;;  %v1155_v27 = vcombine.low %v2442_v48, %v2442_v48 }
0x1611   :  { %1026 = vrot.lane.b32.xlu0 %v1020_v49, %s2076_s3  ;;  %1022 = vrot.lane.b32.xlu1 %v1019_v50, %s2075_s16  ;;  %v208_v19 = vadd.f32 %v2265_v36, %v195_v22  ;;  %v1149_v36 = vrot.slane %v2369_v24, 2  ;;  %v1184_v24 = vld [vmem:[%s2569_s6] sm:$0xff]  ;;  %v1166_v33 = vsel %vm1161_vm5, %v1165_v31, %v1155_v27 }
0x1612   :  { %v1864_v58 = vpack.c.bf16 %v1185_v11, %v1184_v24 }
0x1613   :  { %v1177_v0 = vsel %vm1159_vm4, %v1149_v36, %v2340_v53  ;;  %v1164_v55 = vsel %vm1163_vm6, %v1162_v41, %v1149_v36  ;;  %v1183_v53 = vld [vmem:[%s2568_s5 + $0x18] sm:$0xff]  ;;  %s2078_s5 = smov [#allocation9]  }
0x1614   :  { %v1178_v9 = vsel %vm1161_vm5, %v1177_v0, %v1143_v26  ;;  %1865 = vmatprep.subr.bf16.mxu1 %v1864_v58  ;;  %v1876_v44 = vpack.c.bf16 %v1183_v53, %v1182_v42 }
0x1615   :  { %v1179_v12 = vsel %vm1163_vm6, %v1178_v9, %v1172_v10  ;;  %1867 = vmatpush3.bf16.msra.mxu1 %v1864_v58 }
0x1616   :  { %1869 = vmatprep.subr.bf16.mxu1 %v1868_v14 }
0x1619   :  { %1871 = vmatpush3.bf16.msra.mxu1 %v1868_v14 }
0x161a   :  { %1873 = vmatprep.subr.bf16.mxu1 %v1872_v30 }
0x1683   :  { %v1027_v51 = vpop.permute.xlu0 %1026  ;;  %v1023_v52 = vpop.permute.xlu1 %1022 }
0x1684   :  { %v1029_v56 = vsel %vm94_vm2, %v1023_v52, %v1027_v51 }
0x1685   :  { %1736 = vmatmul.mubr.msk.f32.vlgmr.msra.gmra.mrb[10].mxu0 %vm227_vm3, %v1029_v56 }
0x1758   :  { %v1099_v59 = vpop.f32.mrb[10].mxu0 }
0x1759   :  { %v1110_v60 = vadd.f32 %v1099_v59, %v2261_v32  ;;  %v1737_v61 = vpop.f32.mrb[11].mxu0  ;;  %v1103_v62 = vadd.f32 %v1099_v59, %v208_v19 }
0x175b   :  { %1112 = vrot.lane.b32.xlu1 %v1110_v60, %s2075_s16  ;;  %v1474_v63 = vmul.f32 -1.442695, %v1103_v62 }
0x175d   :  { %1943 = vpow2.f32 %v1474_v63 }
0x1767   :  { %v1944_v2 = vpop.eup %1943 }
0x1768   :  { %v1107_v4 = vadd.f32 1.0, %v1944_v2 }
0x176a   :  { %1945 = vrcp.f32 %v1107_v4 }
0x1774   :  { %v1946_v1 = vpop.eup %1945 }
0x17cd   :  { %v1113_v7 = vpop.permute.xlu1 %1112 }
0x17ce   :  { %v1115_v15 = vmul.f32 %v1946_v1, %v1113_v7 }
0x17d0   :  { %1117 = vrot.lane.b32.xlu0 %v1115_v15, %s2075_s16 }
0x1842   :  { %v1118_v32 = vpop.permute.xlu0 %1117 }
0x1843   :  { %v1120_v5 = vadd.f32 %v1118_v32, %v208_v19 }
0x1845   :  { %1947 = vtanh.f32 %v1120_v5 }
0x184f   :  { %v1948_v6 = vpop.eup %1947 }
0x1850   :  { %v1122_v21 = vsub.f32 %v2442_v48, %v1948_v6 }
0x1852   :  { %1124 = vrot.lane.b32.xlu1 %v1122_v21, %s2076_s3 }
0x18c4   :  { %v1125_v57 = vpop.permute.xlu1 %1124 }
0x18c5   :  { %v1127_v8 = vmul.f32 %v1946_v1, %v1125_v57 }
0x18c7   :  { %1129 = vrot.lane.b32.xlu0 %v1127_v8, %s2077_s25 }
0x18cb   :  { %1192 = vrot.lane.b32.xlu0 %v1179_v12, %s2075_s16 }
0x1939   :  { %v1130_v23 = vpop.permute.xlu0 %1129 }
0x193a   :  { %v1132_v28 = vadd.f32 %v1948_v6, %v1130_v23 }
0x193c   :  { %v1157_v29 = vrot.slane %v1132_v28, 2 }
0x193d   :  { %v1193_v45 = vpop.permute.xlu0 %1192 }
0x193e   :  { %v1167_v34 = vsel %vm1163_vm6, %v1166_v33, %v1157_v29  ;;  %v1174_v37 = vsel %vm1159_vm4, %v1157_v29, %v2442_v48 }
0x193f   :  { %1277 = vrot.lane.b32.xlu0 %v1167_v34, %s2075_s16  ;;  %v1175_v16 = vsel %vm1161_vm5, %v1174_v37, %v1152_v20 }
0x1940   :  { %v1176_v39 = vsel %vm1163_vm6, %v1175_v16, %v1169_v35 }
0x1941   :  { %1190 = vrot.lane.b32.xlu1 %v1176_v39, %s2075_s16 }
0x1945   :  { %1275 = vrot.lane.b32.xlu1 %v1164_v55, %s2075_s16 }
0x1949   :  { %1134 = vrot.lane.b32.xlu1 %v1132_v28, %s2075_s16  ;;  %s1437_s16 = sshll.u32 %s2078_s5, 4  ;;  %s1438_s16 = int_to_ptr.vmem [resolvable:$true] %s1437_s16 }
0x194a   :  { %s2015_s19 = scalar_lea.vmem %s1438_s16, 64  ;;  %p2020_p11 = scmp.lt.s32.totalorder %s1438_s16, %s1438_s16 }
0x194b   :  { %p2016_p10 = scmp.ne.s32.totalorder %s1438_s16, %s2015_s19  ;;  %p2021_p12 = scmp.lt.s32.totalorder %s2015_s19, %s2015_s19 }
0x194d   :  { %p2022_p13 = por %p2021_p12, %p2020_p11 }
0x194f   :  { %p2023_p0 = pnand %p2022_p13, %p2016_p10 }
0x19b1   :  { %v1278_v47 = vpop.permute.xlu0 %1277 }
0x19b3   :  { %v1191_v43 = vpop.permute.xlu1 %1190 }
0x19b4   :  { %1746 = vmatprep.mubr.msk.f32.mxu1 %vm94_vm2, %v1191_v43 }
0x19b5   :  { %1747 = vmatmul.mubr.msk.f32.vlgmr.msra.gmra.mrb[8].mxu1 %vm94_vm2, %v1193_v45 }
0x19b6   :  { %1875 = vmatpush3.bf16.msra.mxu1 %v1872_v30 }
0x19b7   :  { %v1276_v54 = vpop.permute.xlu1 %1275  ;;  %1877 = vmatprep.subr.bf16.mxu1 %v1876_v44 }
0x19b8   :  { %1757 = vmatprep.mubr.msk.f32.mxu1 %vm94_vm2, %v1276_v54 }
0x19ba   :  { %1879 = vmatpush3.bf16.msra.mxu1 %v1876_v44 }
0x19bb   :  { %v1135_v46 = vpop.permute.xlu1 %1134 }
0x19bc   :  { %1138 = vst.msk [vmem:[#allocation9] sm:$0x3] %vm1137_vm7, %v1135_v46 }
0x19bd   :  { %1141 = vst.msk [vmem:[#allocation9] sm:$0xc] %vm1140_vm8, %v1135_v46  ;;  %1758 = vmatmul.mubr.msk.f32.vlgmr.msra.gmra.mrb[8].mxu1 %vm94_vm2, %v1278_v47 }
0x19be   :  { %2026 = shalt.err (!%p2023_p0)
}
0x19bf   :  { %s2027_s22 = scalar_lea.hbm %s2572_s9, 64 }
0x19c0   :  { %p2028_p1 = scmp.ne.s32.totalorder %s2572_s9, %s2027_s22  ;;  %p2031_p2 = scmp.lt.u32.totalorder %s2027_s22, %s2572_s9 }
0x19c2   :  { %p2033_p3 = pnand %p2031_p2, %p2028_p1 }
0x19c4   :  { %2036 = shalt.err (!%p2033_p3)
}
0x19c5   :  { %s2079_s24 = smov 2   ;;  %v2080_v48 = vmov 1983009808   ;;  %v1479_v51 = vld [vmem:[%s2570_s7] ss:$0 sm:$0xff]  ;;  %vm1411_vm9 = vcmask 123904  }
0x19c6   :  { %1443 = dma.vmem_to_hbm [thread:$0]  %s1438_s16, 64, %s2572_s9, [#allocation10], %s2077_s25, %s2077_s25, %s2079_s24   ;;  %v1371_v49 = vunpack.c.l.s4 %v2080_v48 }
0x19c7   :  { %s2081_s9 = smov [#allocation8]  }
0x19c8   :  { %v1372_v50 = vunpack.c.0.s8 %v1371_v49  ;;  %s1425_s28 = sshll.u32 %s2081_s9, 4  ;;  %s1426_s28 = int_to_ptr.vmem [resolvable:$true] %s1425_s28 }
0x19c9   :  { %s2037_s7 = scalar_lea.vmem %s1426_s28, 256  ;;  %p2042_p5 = scmp.lt.s32.totalorder %s1426_s28, %s1426_s28 }
0x19ca   :  { %v1375_v52 = vsub.s32 %v1372_v50, %v2178_v3  ;;  %p2038_p4 = scmp.ne.s32.totalorder %s1426_s28, %s2037_s7  ;;  %p2043_p6 = scmp.lt.s32.totalorder %s2037_s7, %s2037_s7 }
0x19cc   :  { %p2044_p7 = por %p2043_p6, %p2042_p5 }
0x19ce   :  { %p2045_p8 = pnand %p2044_p7, %p2038_p4 }
0x1a90   :  { %v1759_v56 = vpop.f32.mrb[8].mxu1 }
0x1a91   :  { %v1366_v59 = vadd.f32 %v1759_v56, %v1479_v51  ;;  %v1349_v60 = vpop.f32.mrb[9].mxu1 }
0x1a92   :  { %v1365_v61 = vadd.f32 %v1479_v51, %v1349_v60 }
0x1a93   :  { %v1386_v22 = vcombine.high %v1366_v59, %v1366_v59  ;;  %v1393_v19 = vrot.slane %v1366_v59, %v1375_v52 }
0x1a94   :  { %v1369_v62 = vcombine.high %v1365_v61, %v1365_v61  ;;  %v1376_v63 = vrot.slane %v1365_v61, %v1375_v52 }
0x1a95   :  { %v1400_v2 = vrot.slane %v1386_v22, %v1375_v52  ;;  %v1401_v4 = vcombine.high %v1393_v19, %v1393_v19  ;;  %1416 = vst.msk [vmem:[#allocation8 + $0x8] sm:$0x3] %vm1411_vm9, %v1393_v19 }
0x1a96   :  { %v1383_v1 = vrot.slane %v1369_v62, %v1375_v52  ;;  %v1384_v7 = vcombine.high %v1376_v63, %v1376_v63  ;;  %1412 = vst.msk [vmem:[#allocation8] sm:$0x3] %vm1411_vm9, %v1376_v63 }
0x1a97   :  { %v1402_v3 = vcombine.high %v1400_v2, %v1400_v2  ;;  %1417 = vst.msk [vmem:[#allocation8 + $0xa] sm:$0x3] %vm1411_vm9, %v1401_v4  ;;  %1418 = vst.msk [vmem:[#allocation8 + $0xc] sm:$0x3] %vm1411_vm9, %v1400_v2 }
0x1a98   :  { %v1385_v15 = vcombine.high %v1383_v1, %v1383_v1  ;;  %1413 = vst.msk [vmem:[#allocation8 + $0x2] sm:$0x3] %vm1411_vm9, %v1384_v7  ;;  %1414 = vst.msk [vmem:[#allocation8 + $0x4] sm:$0x3] %vm1411_vm9, %v1383_v1 }
0x1a99   :  { %1419 = vst.msk [vmem:[#allocation8 + $0xe] sm:$0x3] %vm1411_vm9, %v1402_v3 }
0x1a9a   :  { %1415 = vst.msk [vmem:[#allocation8 + $0x6] sm:$0x3] %vm1411_vm9, %v1385_v15 }
0x1a9b   :  { %2048 = shalt.err (!%p2045_p8)
}
0x1a9c   :  { %s2049_s2 = scalar_lea.hbm %s2571_s8, 256 }
0x1a9d   :  { %p2050_p9 = scmp.ne.s32.totalorder %s2571_s8, %s2049_s2  ;;  %p2053_p10 = scmp.lt.u32.totalorder %s2049_s2, %s2571_s8 }
0x1a9f   :  { %p2055_p11 = pnand %p2053_p10, %p2050_p9 }
0x1aa1   :  { %2058 = shalt.err (!%p2055_p11)
}
0x1aa2   :  { %1431 = dma.vmem_to_hbm [thread:$0]  %s1426_s28, 256, %s2571_s8, [#allocation4], %s2077_s25, %s2077_s25, %s2079_s24  }
0x1aa3   :  { %2063 = dma.done.wait [#allocation4], 256  }
0x1aa4   :  { %2064 = vsyncadd [#allocation4], 4294967040 }
0x1aa5   :  { %2065 = dma.done.wait [#allocation10], 64  }
0x1aa6   :  { %2066 = vsyncadd [#allocation10], 4294967232 }
0x1aa7   :  { %1450 = vsyncpa [#allocation3], 1 }
0x1aa8   :  { %1451 = vsyncpa [#allocation6], 1 }
0x1aa9   :  { %1452 = vsyncpa [#allocation4], 1 }
0x1aaa   :  { %1453 = vsyncpa [#allocation10], 1 }

</bundles_post_ra>
